<compile_context>
chip_gen: v7x
topology: tpu7x:2x2x1
jax: 0.10.0
libtpu: 0.0.40
codegen_flags: <defaults>
</compile_context>

<pallas_src>
import functools

import jax
import jax.numpy as jnp
from jax.experimental import pallas as pl
from jax.experimental.pallas import tpu as pltpu


def _round_up(x, m):
    return ((x + m - 1) // m) * m


def _pad_to(x, shape):
    pads = [(0, t - s) for s, t in zip(x.shape, shape)]
    return jnp.pad(x, pads)


def _pick_tile(n_pad, target):
    """Largest multiple of 128 <= target that divides n_pad (n_pad % 128 == 0)."""
    t = max(128, (min(target, n_pad) // 128) * 128)
    while n_pad % t != 0:
        t -= 128
    return t


# ----------------------------------------------------------------------------
# Pallas kernel: one RGCN layer + FFN + residual + LayerNorm, tiled over
# destination nodes (parallel) with a (basis, src-tile) reduction.
#
#   agg[m]  = sum_b sum_s A'_b[m, s] @ M_b[s]           (bf16 MXU, f32 acc)
#   conv[m] = relu( agg[m] + HW[m] )                    (HW = H @ W_loop + b_conv)
#   y[m]    = conv[m] @ W_ffn + b_ffn + initial[m]
#   out[m]  = LayerNorm(y[m]; gamma, beta, eps)         (over the real D lanes)
# ----------------------------------------------------------------------------
def _rgcn_block_kernel(adj_ref, msg_ref, hw_ref, wffn_ref, vecs_ref, init_ref,
                       out_ref, acc_ref, *, eps, d_real):
    b = pl.program_id(1)
    s = pl.program_id(2)

    @pl.when(jnp.logical_and(b == 0, s == 0))
    def _init():
        acc_ref[...] = jnp.zeros_like(acc_ref)

    # One bf16 matmul per step: combined-adjacency tile @ basis-message tile.
    acc_ref[...] += jnp.dot(adj_ref[0], msg_ref[0],
                            preferred_element_type=jnp.float32)

    last_step = jnp.logical_and(b == pl.num_programs(1) - 1,
                                s == pl.num_programs(2) - 1)

    @pl.when(last_step)
    def _epilogue():
        # self-loop (+ conv bias, precomputed) + ReLU   (DGL RelGraphConv order)
        conv = jnp.maximum(acc_ref[...] + hw_ref[...], 0.0)
        # TODO(synk): dropout=0 in this config, so no dropout op is emitted.

        # shared FFN + bias + residual to the initial embeddings
        y = jnp.dot(conv.astype(jnp.bfloat16), wffn_ref[...],
                    preferred_element_type=jnp.float32)
        y = y + vecs_ref[0:1, :] + init_ref[...]

        # LayerNorm over the real hidden lanes (pad lanes of y are exactly 0).
        dp = y.shape[-1]
        lane = jax.lax.broadcasted_iota(jnp.int32, (1, dp), 1)
        mask = (lane < d_real).astype(jnp.float32)
        inv_d = 1.0 / float(d_real)
        mu = jnp.sum(y * mask, axis=-1, keepdims=True) * inv_d
        cen = (y - mu) * mask
        var = jnp.sum(cen * cen, axis=-1, keepdims=True) * inv_d
        yn = cen * jax.lax.rsqrt(var + eps)
        out_ref[...] = (yn * vecs_ref[1:2, :] + vecs_ref[2:3, :]).astype(out_ref.dtype)


def _rgcn_layer_pallas(adj_b, msg_b, hw, wffn_bf, vecs, init_p,
                       *, eps, d_real, tm, ts):
    B, n_pad, _ = adj_b.shape
    dp = hw.shape[-1]
    grid = (n_pad // tm, B, n_pad // ts)

    kernel = functools.partial(_rgcn_block_kernel, eps=eps, d_real=d_real)

    return pl.pallas_call(
        kernel,
        out_shape=jax.ShapeDtypeStruct((n_pad, dp), jnp.float32),
        grid_spec=pltpu.PrefetchScalarGridSpec(
            num_scalar_prefetch=0,
            grid=grid,
            in_specs=[
                pl.BlockSpec((1, tm, ts), lambda m, b, s: (b, m, s)),   # A'_b tile
                pl.BlockSpec((1, ts, dp), lambda m, b, s: (b, s, 0)),   # M_b src tile
                pl.BlockSpec((tm, dp), lambda m, b, s: (m, 0)),         # H@W_loop + b_conv
                pl.BlockSpec((dp, dp), lambda m, b, s: (0, 0)),         # W_ffn (bf16)
                pl.BlockSpec((8, dp), lambda m, b, s: (0, 0)),          # [b_ffn, gamma, beta]
                pl.BlockSpec((tm, dp), lambda m, b, s: (m, 0)),         # initial dst tile
            ],
            out_specs=pl.BlockSpec((tm, dp), lambda m, b, s: (m, 0)),
            scratch_shapes=[pltpu.VMEM((tm, dp), jnp.float32)],
        ),
        compiler_params=pltpu.CompilerParams(
            dimension_semantics=("parallel", "arbitrary", "arbitrary"),
            vmem_limit_bytes=32 * 1024 * 1024,
        ),
    )(adj_b, msg_b, hw, wffn_bf, vecs, init_p)


# ----------------------------------------------------------------------------
# Whole-module forward: h stays padded across layers, sliced once at the end.
# ----------------------------------------------------------------------------
def _rgcn_forward_impl(params, adj, initial_embeddings, eps, tm_target, ts_target):
    f32, bf16 = jnp.float32, jnp.bfloat16
    R, N, _ = adj.shape
    D = initial_embeddings.shape[-1]
    dp = _round_up(D, 128)
    n_pad = _round_up(N, 128)

    tm = _pick_tile(n_pad, tm_target)
    if n_pad // tm < 2 and n_pad > 128:      # keep >=2 dst tiles for the v7x 2-TC split
        tm = _pick_tile(n_pad, n_pad // 2)
    ts = _pick_tile(n_pad, ts_target)

    adj_p = _pad_to(adj.astype(f32), (R, n_pad, n_pad))
    init_p = _pad_to(initial_embeddings.astype(f32), (n_pad, dp))
    wffn_bf = _pad_to(params["w_ffn"].astype(f32), (dp, dp)).astype(bf16)

    # Small per-channel vectors packed into one (8, dp) operand:
    # rows = [b_ffn, gamma, beta, 0, 0, 0, 0, 0]; pad lanes stay exactly zero.
    vecs = jnp.zeros((8, dp), f32)
    vecs = vecs.at[0, :D].set(params["b_ffn"].astype(f32))
    vecs = vecs.at[1, :D].set(params["ln_gamma"].astype(f32))
    vecs = vecs.at[2, :D].set(params["ln_beta"].astype(f32))

    h = init_p
    for layer in params["layers"]:
        B = layer["basis"].shape[0]
        # Relation folding: A'_b = sum_r w_comp[r,b] * A_r   (bf16 MXU input)
        adj_b = jnp.einsum("rb,rmn->bmn",
                           layer["w_comp"].astype(f32), adj_p).astype(bf16)
        # Basis messages M_b = H @ V_b (B*N*D^2 FLOPs, no (R,D,D) materialization).
        basis_p = _pad_to(layer["basis"].astype(f32), (B, dp, dp))
        msg_b = jnp.einsum("nd,bdo->bno", h, basis_p).astype(bf16)
        # Self-loop term precomputed once per layer (f32 epilogue add in-kernel).
        wloop_p = _pad_to(layer["w_loop"].astype(f32), (dp, dp))
        bconv_p = _pad_to(layer["b_conv"].astype(f32), (dp,))
        hw = jnp.dot(h.astype(bf16), wloop_p.astype(bf16),
                     preferred_element_type=f32) + bconv_p[None, :]

        h = _rgcn_layer_pallas(adj_b, msg_b, hw, wffn_bf, vecs, init_p,
                               eps=eps, d_real=D, tm=tm, ts=ts)
    return h[:N, :D]


def rgcn_forward(params, adj, initial_embeddings, *, eps=1e-8,
                 tm_target=256, ts_target=512):
    fn = jax.jit(functools.partial(_rgcn_forward_impl, eps=eps,
                                   tm_target=tm_target, ts_target=ts_target))
    return fn(params, adj, initial_embeddings)


# ----------------------------------------------------------------------------
# Pure-JAX f32 reference (module semantics).
# ----------------------------------------------------------------------------
def rgcn_forward_ref(params, adj, initial_embeddings, *, eps=1e-8):
    h = initial_embeddings
    for layer in params["layers"]:
        w_rel = jnp.einsum("rb,bio->rio", layer["w_comp"], layer["basis"])
        agg = jnp.einsum("rvu,ud,rdo->vo", adj, h, w_rel)
        conv = jnp.maximum(agg + h @ layer["w_loop"] + layer["b_conv"], 0.0)
        y = conv @ params["w_ffn"] + params["b_ffn"] + initial_embeddings
        mu = jnp.mean(y, axis=-1, keepdims=True)
        var = jnp.mean((y - mu) ** 2, axis=-1, keepdims=True)
        h = (y - mu) / jnp.sqrt(var + eps) * params["ln_gamma"] + params["ln_beta"]
    return h


# Reference mirroring the kernel's bf16 staging (combined adjacency, basis
# messages, self-loop and FFN matmuls) for a tight tiling/epilogue check.
def rgcn_forward_matched_ref(params, adj, initial_embeddings, *, eps=1e-8):
    f32, bf16 = jnp.float32, jnp.bfloat16
    h = initial_embeddings.astype(f32)
    for layer in params["layers"]:
        adj_b = jnp.einsum("rb,rmn->bmn", layer["w_comp"], adj).astype(bf16)
        msg_b = jnp.einsum("nd,bdo->bno", h, layer["basis"]).astype(bf16)
        agg = jnp.einsum("bvu,bud->vd", adj_b, msg_b,
                         preferred_element_type=f32)
        hw = jnp.dot(h.astype(bf16), layer["w_loop"].astype(bf16),
                     preferred_element_type=f32) + layer["b_conv"]
        conv = jnp.maximum(agg + hw, 0.0)
        y = jnp.dot(conv.astype(bf16), params["w_ffn"].astype(bf16),
                    preferred_element_type=f32) + params["b_ffn"] + initial_embeddings
        mu = jnp.mean(y, axis=-1, keepdims=True)
        var = jnp.mean((y - mu) ** 2, axis=-1, keepdims=True)
        h = (y - mu) * jax.lax.rsqrt(var + eps) * params["ln_gamma"] + params["ln_beta"]
    return h


def init_params(key, h_dim, num_relations, num_bases, num_hidden_layers):
    def glorot(k, shape):
        fan_in, fan_out = shape[-2], shape[-1]
        lim = (6.0 / (fan_in + fan_out)) ** 0.5
        return jax.random.uniform(k, shape, jnp.float32, -lim, lim)

    keys = jax.random.split(key, 4 + 4 * num_hidden_layers)
    layers = []
    for i in range(num_hidden_layers):
        k0, k1, k2, k3 = keys[4 + 4 * i: 8 + 4 * i]
        layers.append(dict(
            basis=glorot(k0, (num_bases, h_dim, h_dim)),
            w_comp=glorot(k1, (num_relations, num_bases)),
            w_loop=glorot(k2, (h_dim, h_dim)),
            b_conv=jnp.zeros((h_dim,), jnp.float32),
        ))
    return dict(
        layers=layers,
        w_ffn=glorot(keys[0], (h_dim, h_dim)),
        b_ffn=0.01 * jax.random.normal(keys[1], (h_dim,), jnp.float32),
        ln_gamma=jnp.ones((h_dim,), jnp.float32),
        ln_beta=jnp.zeros((h_dim,), jnp.float32),
    )


if __name__ == "__main__":
    h_dim = 32
    num_relations = 4
    num_bases = 2
    num_hidden_layers = 2
    num_nodes = 200          # padded to 256 internally -> 2 dst tiles of 128
    num_edges = 600
    eps = 1e-8

    key = jax.random.PRNGKey(0)
    k_param, k_emb, k_src, k_dst, k_type = jax.random.split(key, 5)

    params = init_params(k_param, h_dim, num_relations, num_bases, num_hidden_layers)

    # Deterministic synthetic graph: edges (src -> dst) with relation types and
    # norms = 1 / in-degree(dst), densified into per-relation adjacency.
    initial_embeddings = jax.random.normal(k_emb, (num_nodes, h_dim), jnp.float32)
    src = jax.random.randint(k_src, (num_edges,), 0, num_nodes)
    dst = jax.random.randint(k_dst, (num_edges,), 0, num_nodes)
    etype = jax.random.randint(k_type, (num_edges,), 0, num_relations)
    in_deg = jnp.zeros((num_nodes,), jnp.float32).at[dst].add(1.0)
    norm = 1.0 / jnp.maximum(in_deg[dst], 1.0)
    adj = jnp.zeros((num_relations, num_nodes, num_nodes), jnp.float32)
    adj = adj.at[etype, dst, src].add(norm)

    out = rgcn_forward(params, adj, initial_embeddings, eps=eps)
    out = jax.block_until_ready(out)
    assert out.shape == (num_nodes, h_dim)

    # Tight check against a bf16-matched reference (validates tiling/epilogue).
    ref_matched = rgcn_forward_matched_ref(params, adj, initial_embeddings, eps=eps)
    assert jnp.allclose(out, ref_matched, atol=3e-2, rtol=3e-2), float(
        jnp.max(jnp.abs(out - ref_matched)))

    # Loose check against the pure f32 reference (bounds bf16 quantization error).
    ref_f32 = rgcn_forward_ref(params, adj, initial_embeddings, eps=eps)
    assert jnp.allclose(out, ref_f32, atol=0.2, rtol=0.2), float(
        jnp.max(jnp.abs(out - ref_f32)))

    print("KERNEL_OK")
</pallas_src>

<mosaic_0001>
module attributes {stable_mosaic.version = 11 : i64} {
  func.func @_rgcn_block_kernel(%arg0: i32, %arg1: i32, %arg2: i32, %arg3: memref<1x128x256xbf16, #tpu.memory_space<vmem>>, %arg4: memref<1x256x128xbf16, #tpu.memory_space<vmem>>, %arg5: memref<128x128xf32, #tpu.memory_space<vmem>>, %arg6: memref<128x128xbf16, #tpu.memory_space<vmem>>, %arg7: memref<8x128xf32, #tpu.memory_space<vmem>>, %arg8: memref<128x128xf32, #tpu.memory_space<vmem>>, %arg9: memref<128x128xf32, #tpu.memory_space<vmem>>, %arg10: memref<128x128xf32, #tpu.memory_space<vmem>>) attributes {dimension_semantics = [#tpu.dimension_semantics<parallel>, #tpu.dimension_semantics<arbitrary>, #tpu.dimension_semantics<arbitrary>], iteration_bounds = array<i64: 2, 2, 1>, scalar_prefetch = 0 : i64, scratch_operands = 1 : i64, tpu.core_type = #tpu.core_type<tc>, window_params = [{transform_indices = @transform_0, window_bounds = array<i64: 1, 128, 256>}, {transform_indices = @transform_1, window_bounds = array<i64: 1, 256, 128>}, {transform_indices = @transform_2, window_bounds = array<i64: 128, 128>}, {pipeline_mode = #tpu.pipeline_mode<synchronous>, transform_indices = @transform_3, window_bounds = array<i64: 128, 128>}, {pipeline_mode = #tpu.pipeline_mode<synchronous>, transform_indices = @transform_4, window_bounds = array<i64: 8, 128>}, {transform_indices = @transform_5, window_bounds = array<i64: 128, 128>}, {transform_indices = @transform_6, window_bounds = array<i64: 128, 128>}]} {
    %c0_i32 = arith.constant 0 : i32
    %0 = arith.cmpi eq, %arg1, %c0_i32 : i32
    %c0_i32_0 = arith.constant 0 : i32
    %1 = arith.cmpi eq, %arg2, %c0_i32_0 : i32
    %2 = arith.andi %0, %1 : i1
    %3 = arith.extui %2 : i1 to i32
    %c0_i32_1 = arith.constant 0 : i32
    %4 = arith.cmpi ne, %3, %c0_i32_1 : i32
    scf.if %4 {
      %cst_13 = arith.constant 0.000000e+00 : f32
      %18 = vector.broadcast %cst_13 : f32 to vector<128x128xf32>
      %c0_14 = arith.constant 0 : index
      %c0_15 = arith.constant 0 : index
      %19 = vector.load %arg10[%c0_14, %c0_15] : memref<128x128xf32, #tpu.memory_space<vmem>>, vector<128x128xf32>
      tpu.vector_store %arg10[%c0_14, %c0_15], %18 {strides = array<i32>} : memref<128x128xf32, #tpu.memory_space<vmem>>, vector<128x128xf32>,
    } else {
    }
    %c0 = arith.constant 0 : index
    %c0_2 = arith.constant 0 : index
    %5 = vector.load %arg10[%c0, %c0_2] : memref<128x128xf32, #tpu.memory_space<vmem>>, vector<128x128xf32>
    %c0_3 = arith.constant 0 : index
    %c0_4 = arith.constant 0 : index
    %c0_5 = arith.constant 0 : index
    %6 = vector.load %arg3[%c0_3, %c0_4, %c0_5] : memref<1x128x256xbf16, #tpu.memory_space<vmem>>, vector<1x128x256xbf16>
    %7 = vector.shape_cast %6 : vector<1x128x256xbf16> to vector<128x256xbf16>
    %c0_6 = arith.constant 0 : index
    %c0_7 = arith.constant 0 : index
    %c0_8 = arith.constant 0 : index
    %8 = vector.load %arg4[%c0_6, %c0_7, %c0_8] : memref<1x256x128xbf16, #tpu.memory_space<vmem>>, vector<1x256x128xbf16>
    %9 = vector.shape_cast %8 : vector<1x256x128xbf16> to vector<256x128xbf16>
    %cst = arith.constant dense<0.000000e+00> : vector<128x128xf32>
    %10 = tpu.matmul %7, %9, %cst {dimension_numbers = #tpu.dot_dimension_numbers<[1], [0], [0], [1], [0, 0, 1, 1], [], []>} : vector<128x256xbf16>, vector<256x128xbf16>, vector<128x128xf32> -> vector<128x128xf32>
    %11 = arith.addf %5, %10 : vector<128x128xf32>
    %c0_9 = arith.constant 0 : index
    %c0_10 = arith.constant 0 : index
    %12 = vector.load %arg10[%c0_9, %c0_10] : memref<128x128xf32, #tpu.memory_space<vmem>>, vector<128x128xf32>
    tpu.vector_store %arg10[%c0_9, %c0_10], %11 {strides = array<i32>} : memref<128x128xf32, #tpu.memory_space<vmem>>, vector<128x128xf32>,
    %c1_i32 = arith.constant 1 : i32
    %13 = arith.cmpi eq, %arg1, %c1_i32 : i32
    %c0_i32_11 = arith.constant 0 : i32
    %14 = arith.cmpi eq, %arg2, %c0_i32_11 : i32
    %15 = arith.andi %13, %14 : i1
    %16 = arith.extui %15 : i1 to i32
    %c0_i32_12 = arith.constant 0 : i32
    %17 = arith.cmpi ne, %16, %c0_i32_12 : i32
    scf.if %17 {
      %c0_13 = arith.constant 0 : index
      %c0_14 = arith.constant 0 : index
      %18 = vector.load %arg10[%c0_13, %c0_14] : memref<128x128xf32, #tpu.memory_space<vmem>>, vector<128x128xf32>
      %c0_15 = arith.constant 0 : index
      %c0_16 = arith.constant 0 : index
      %19 = vector.load %arg5[%c0_15, %c0_16] : memref<128x128xf32, #tpu.memory_space<vmem>>, vector<128x128xf32>
      %20 = arith.addf %18, %19 : vector<128x128xf32>
      %cst_17 = arith.constant 0.000000e+00 : f32
      %21 = vector.broadcast %cst_17 : f32 to vector<128x128xf32>
      %22 = arith.maximumf %20, %21 : vector<128x128xf32>
      %23 = arith.truncf %22 : vector<128x128xf32> to vector<128x128xbf16>
      %c0_18 = arith.constant 0 : index
      %c0_19 = arith.constant 0 : index
      %24 = vector.load %arg6[%c0_18, %c0_19] : memref<128x128xbf16, #tpu.memory_space<vmem>>, vector<128x128xbf16>
      %cst_20 = arith.constant dense<0.000000e+00> : vector<128x128xf32>
      %25 = tpu.matmul %23, %24, %cst_20 {dimension_numbers = #tpu.dot_dimension_numbers<[1], [0], [0], [1], [0, 0, 1, 1], [], []>} : vector<128x128xbf16>, vector<128x128xbf16>, vector<128x128xf32> -> vector<128x128xf32>
      %c0_21 = arith.constant 0 : index
      %c0_22 = arith.constant 0 : index
      %26 = vector.load %arg7[%c0_21, %c0_22] : memref<8x128xf32, #tpu.memory_space<vmem>>, vector<1x128xf32>
      %27 = vector.broadcast %26 : vector<1x128xf32> to vector<128x128xf32>
      %28 = arith.addf %25, %27 : vector<128x128xf32>
      %c0_23 = arith.constant 0 : index
      %c0_24 = arith.constant 0 : index
      %29 = vector.load %arg8[%c0_23, %c0_24] : memref<128x128xf32, #tpu.memory_space<vmem>>, vector<128x128xf32>
      %30 = arith.addf %28, %29 : vector<128x128xf32>
      %31 = tpu.iota {dimensions = array<i32: 1>} : vector<1x128xi32>
      %c32_i32 = arith.constant 32 : i32
      %32 = vector.broadcast %c32_i32 : i32 to vector<1x128xi32>
      %33 = arith.cmpi slt, %31, %32 : vector<1x128xi32>
      %34 = arith.extui %33 : vector<1x128xi1> to vector<1x128xi32>
      %35 = arith.sitofp %34 : vector<1x128xi32> to vector<1x128xf32>
      %36 = vector.broadcast %35 : vector<1x128xf32> to vector<128x128xf32>
      %37 = arith.mulf %30, %36 : vector<128x128xf32>
      %cst_25 = arith.constant dense<0.000000e+00> : vector<128xf32>
      %38 = vector.multi_reduction <add>, %37, %cst_25 [1] : vector<128x128xf32> to vector<128xf32>
      %39 = vector.shape_cast %38 : vector<128xf32> to vector<128x1xf32>
      %cst_26 = arith.constant 3.125000e-02 : f32
      %40 = vector.broadcast %cst_26 : f32 to vector<128x1xf32>
      %41 = arith.mulf %39, %40 : vector<128x1xf32>
      %42 = vector.broadcast %41 : vector<128x1xf32> to vector<128x128xf32>
      %43 = arith.subf %30, %42 : vector<128x128xf32>
      %44 = vector.broadcast %35 : vector<1x128xf32> to vector<128x128xf32>
      %45 = arith.mulf %43, %44 : vector<128x128xf32>
      %46 = arith.mulf %45, %45 : vector<128x128xf32>
      %cst_27 = arith.constant dense<0.000000e+00> : vector<128xf32>
      %47 = vector.multi_reduction <add>, %46, %cst_27 [1] : vector<128x128xf32> to vector<128xf32>
      %48 = vector.shape_cast %47 : vector<128xf32> to vector<128x1xf32>
      %cst_28 = arith.constant 3.125000e-02 : f32
      %49 = vector.broadcast %cst_28 : f32 to vector<128x1xf32>
      %50 = arith.mulf %48, %49 : vector<128x1xf32>
      %cst_29 = arith.constant 9.99999993E-9 : f32
      %51 = vector.broadcast %cst_29 : f32 to vector<128x1xf32>
      %52 = arith.addf %50, %51 : vector<128x1xf32>
      %53 = math.rsqrt %52 : vector<128x1xf32>
      %54 = vector.broadcast %53 : vector<128x1xf32> to vector<128x128xf32>
      %55 = arith.mulf %45, %54 : vector<128x128xf32>
      %c1 = arith.constant 1 : index
      %c0_30 = arith.constant 0 : index
      %56 = vector.load %arg7[%c1, %c0_30] : memref<8x128xf32, #tpu.memory_space<vmem>>, vector<1x128xf32>
      %57 = vector.broadcast %56 : vector<1x128xf32> to vector<128x128xf32>
      %58 = arith.mulf %55, %57 : vector<128x128xf32>
      %c2 = arith.constant 2 : index
      %c0_31 = arith.constant 0 : index
      %59 = vector.load %arg7[%c2, %c0_31] : memref<8x128xf32, #tpu.memory_space<vmem>>, vector<1x128xf32>
      %60 = vector.broadcast %59 : vector<1x128xf32> to vector<128x128xf32>
      %61 = arith.addf %58, %60 : vector<128x128xf32>
      %c0_32 = arith.constant 0 : index
      %c0_33 = arith.constant 0 : index
      %62 = vector.load %arg9[%c0_32, %c0_33] : memref<128x128xf32, #tpu.memory_space<vmem>>, vector<128x128xf32>
      tpu.vector_store %arg9[%c0_32, %c0_33], %61 {strides = array<i32>} : memref<128x128xf32, #tpu.memory_space<vmem>>, vector<128x128xf32>,
    } else {
    }
    return
  }
  func.func @transform_0(%arg0: i32, %arg1: i32, %arg2: i32) -> (i32, i32, i32) {
    %c0_i32 = arith.constant 0 : i32
    return %arg1, %arg0, %arg2 : i32, i32, i32
  }
  func.func @transform_1(%arg0: i32, %arg1: i32, %arg2: i32) -> (i32, i32, i32) {
    %c0_i32 = arith.constant 0 : i32
    %c0_i32_0 = arith.constant 0 : i32
    return %arg1, %arg2, %c0_i32 : i32, i32, i32
  }
  func.func @transform_2(%arg0: i32, %arg1: i32, %arg2: i32) -> (i32, i32) {
    %c0_i32 = arith.constant 0 : i32
    %c0_i32_0 = arith.constant 0 : i32
    return %arg0, %c0_i32 : i32, i32
  }
  func.func @transform_3(%arg0: i32, %arg1: i32, %arg2: i32) -> (i32, i32) {
    %c0_i32 = arith.constant 0 : i32
    %c0_i32_0 = arith.constant 0 : i32
    %c0_i32_1 = arith.constant 0 : i32
    return %c0_i32, %c0_i32_0 : i32, i32
  }
  func.func @transform_4(%arg0: i32, %arg1: i32, %arg2: i32) -> (i32, i32) {
    %c0_i32 = arith.constant 0 : i32
    %c0_i32_0 = arith.constant 0 : i32
    %c0_i32_1 = arith.constant 0 : i32
    return %c0_i32, %c0_i32_0 : i32, i32
  }
  func.func @transform_5(%arg0: i32, %arg1: i32, %arg2: i32) -> (i32, i32) {
    %c0_i32 = arith.constant 0 : i32
    %c0_i32_0 = arith.constant 0 : i32
    return %arg0, %c0_i32 : i32, i32
  }
  func.func @transform_6(%arg0: i32, %arg1: i32, %arg2: i32) -> (i32, i32) {
    %c0_i32 = arith.constant 0 : i32
    %c0_i32_0 = arith.constant 0 : i32
    return %arg0, %c0_i32 : i32, i32
  }
}

</mosaic_0001>

<bundles_post_ra>
// kernel: _rgcn_forward_impl.2
= control target key start
LH: loop header
LB: loop body
LE: loop exit
PB: predicated region body
PF: predicated region fallthrough
CT: control target
= control target key end

     0   :  { %s1861_s21 = smov 0   ;;  %s1863_s22 = smov 0   ;;  %s2286_s0 = inlined_call_operand.vmem [shape: bf16[2,256,256], index: 0, kind: input, shape index: {}]   ;;  %s2287_s1 = inlined_call_operand.vmem [shape: bf16[2,256,128], index: 1, kind: input, shape index: {}]   ;;  %s2288_s2 = inlined_call_operand.vmem [shape: f32[256,128], index: 2, kind: input, shape index: {}]   ;;  %s2289_s3 = inlined_call_operand.vmem [shape: bf16[128,128], index: 3, kind: input, shape index: {}]   ;;  %s2290_s4 = inlined_call_operand.vmem [shape: f32[8,128], index: 4, kind: input, shape index: {}]   ;;  %s2291_s5 = inlined_call_operand.vmem [shape: f32[256,128], index: 5, kind: input, shape index: {}]   ;;  %s2292_s6 = inlined_call_operand.vmem [shape: f32[256,128], index: 6, kind: output, shape index: {}]  }
   0x1   :  { %s1865_s23 = smov 0   ;;  %s1867_s24 = smov 0  }
   0x2   :  { %s1869_s25 = smov 0  }
   0x3 LB: > { %s31_s26 = sadd.s32 1, %s1814_s23  ;;  %s35_s27 = sadd.s32 1, %s1818_s24  ;;  %s1822_s25 = sphi %s1869_s25, %s16_s25   ;;  %s1818_s24 = sphi %s1867_s24, %s2298_s24   ;;  %s1814_s23 = sphi %s1865_s23, %s2297_s23   ;;  %s1810_s22 = sphi %s1863_s22, %s2296_s22   ;;  %s1806_s21 = sphi %s1861_s21, %s2295_s21  }
   0x4   : > { %p33_p0 = scmp.ge.s32.totalorder %s31_s26, 2  ;;  %p1454_p1 = scmp.ge.s32.totalorder %s1822_s25, 1 }
   0x5   : > { %p285_p2 = scmp.lt.s32.totalorder %s1822_s25, 5 }
   0x6   : > { %s2300_s26 = smov (%p33_p0, %s31_s26), 0  ;;  %s2302_s27 = smov (!%p33_p0, %s35_s27), %s1818_s24 }
   0x7   : > { %p286_p3 = pnand %p1454_p1, %p285_p2  ;;  %p37_p4 = scmp.ge.s32.totalorder %s2302_s27, 2 }
   0x8   : > { %s1455_s28 = sshll.u32 (!%p286_p3), %s1810_s22, 4  ;;  %p345_p5 = scmp.lt.s32.totalorder (!%p286_p3), %s1806_s21, 1 }
   0x9   : > { %s2304_s27 = smov (%p37_p4, %s2302_s27), 0  ;;  %289 = sbr.rel (%p286_p3) target bundleno = 875 (0x36b), region = 44 }
   0xa   : > { %2293 = sst [smem:[#allocation3_spill]] %s2304_s27  ;;  %p347_p6 = scmp.lt.s32.totalorder (!%p286_p3), %s1455_s28, 31 }
   0xb   : > { %p388_p7 = scmp.eq.s32.totalorder (!%p286_p3), %s1806_s21, 0 }
  0x10   : > { %s346_s29 = scalar_select %p345_p5, %s1806_s21, 1 }
  0x11   : > { %s2306_s28 = smov (!%p347_p6, %s1455_s28), 31  ;;  %393 = sbr.rel (!%p388_p7) target bundleno = 27 (0x1b), region = 48 }
  0x12   : > { %s1457_s30 = sshll.u32 %s346_s29, 6  ;;  %s1515_s7 = sshll.u32 %s346_s29, 7  ;;  %v1824_v0 = vmov (%p388_p7), 0.0  }
  0x13   : > { %s1456_s8 = sshll.u32 %s2306_s28, 1  ;;  %s1899_s11 = scalar_lea.vmem %s2287_s1, %s1515_s7  ;;  %394 = vst [vmem:[#allocation2] sm:$0xff] (%p388_p7), %v1824_v0  ;;  %395 = vst [vmem:[#allocation2 + $0x8] sm:$0xff] (%p388_p7), %v1824_v0 }
  0x14   : > { %s354_s12 = sadd.s32 %s1457_s30, %s1456_s8  ;;  %s1462_s13 = sshll.u32 %s2306_s28, 3  ;;  %396 = vst [vmem:[#allocation2 + $0x10] sm:$0xff] (%p388_p7), %v1824_v0  ;;  %397 = vst [vmem:[#allocation2 + $0x18] sm:$0xff] (%p388_p7), %v1824_v0 }
  0x15   : > { %s1458_s14 = sshll.u32 %s354_s12, 2  ;;  %s1904_s17 = scalar_lea.vmem %s2288_s2, %s1462_s13  ;;  %398 = vst [vmem:[#allocation2 + $0x20] sm:$0xff] (%p388_p7), %v1824_v0  ;;  %399 = vst [vmem:[#allocation2 + $0x28] sm:$0xff] (%p388_p7), %v1824_v0 }
  0x16   : > { %s1909_s20 = scalar_lea.vmem %s2286_s0, %s1458_s14  ;;  %s1914_s27 = scalar_lea.vmem %s2291_s5, %s1462_s13  ;;  %400 = vst [vmem:[#allocation2 + $0x30] sm:$0xff] (%p388_p7), %v1824_v0  ;;  %401 = vst [vmem:[#allocation2 + $0x38] sm:$0xff] (%p388_p7), %v1824_v0 }
  0x17   : > { %s1919_s28 = scalar_lea.vmem %s2292_s6, %s1462_s13  ;;  %402 = vst [vmem:[#allocation2 + $0x40] sm:$0xff] (%p388_p7), %v1824_v0  ;;  %403 = vst [vmem:[#allocation2 + $0x48] sm:$0xff] (%p388_p7), %v1824_v0 }
  0x18   : > { %404 = vst [vmem:[#allocation2 + $0x50] sm:$0xff] %v1824_v0  ;;  %405 = vst [vmem:[#allocation2 + $0x58] sm:$0xff] %v1824_v0 }
  0x19   : > { %406 = vst [vmem:[#allocation2 + $0x60] sm:$0xff] %v1824_v0  ;;  %407 = vst [vmem:[#allocation2 + $0x68] sm:$0xff] %v1824_v0 }
  0x1a   : > { %408 = vst [vmem:[#allocation2 + $0x70] sm:$0xff] %v1824_v0  ;;  %409 = vst [vmem:[#allocation2 + $0x78] sm:$0xff] %v1824_v0 }
  0x1b PF: > { %v1704_v1 = vld [vmem:[%s1899_s11 + $0x40] sm:$0xff]   ;;  %v1706_v3 = vld [vmem:[%s1899_s11 + $0x48] sm:$0xff]   ;;  %v1708_v5 = vld [vmem:[%s1899_s11 + $0x50] sm:$0xff]   ;;  %p779_p8 = scmp.eq.s32.totalorder %s1806_s21, 1 }
  0x1c   : > { %v1705_v2 = vld [vmem:[%s1899_s11] sm:$0xff]   ;;  %1518 = vmatprep.subr.bf16.mxu0 %v1704_v1  ;;  %1630 = vmatprep.subr.bf16.mxu1 %v1704_v1  ;;  %v1707_v4 = vld [vmem:[%s1899_s11 + $0x8] sm:$0xff]   ;;  %v1709_v6 = vld [vmem:[%s1899_s11 + $0x10] sm:$0xff]  }
  0x1d   : > { %1519 = vmatpush3.bf16.msra.mxu0 %v1705_v2  ;;  %1638 = vmatpush3.bf16.msra.mxu1 %v1705_v2  ;;  %v1710_v7 = vld [vmem:[%s1899_s11 + $0x58] sm:$0xff]   ;;  %v1712_v9 = vld [vmem:[%s1899_s11 + $0x60] sm:$0xff]   ;;  %v1714_v11 = vld [vmem:[%s1899_s11 + $0x68] sm:$0xff]  }
  0x1e   : > { %1520 = vmatprep.subr.bf16.mxu0 %v1706_v3  ;;  %1631 = vmatprep.subr.bf16.mxu1 %v1706_v3  ;;  %v1711_v8 = vld [vmem:[%s1899_s11 + $0x18] sm:$0xff]   ;;  %v1713_v10 = vld [vmem:[%s1899_s11 + $0x20] sm:$0xff]   ;;  %v1715_v14 = vld [vmem:[%s1899_s11 + $0x28] sm:$0xff]  }
  0x1f   : > { %v1722_v12 = vld [vmem:[%s1909_s20 + $0x4] ss:$8 sps:$4 sm:$0xff]   ;;  %v1716_v15 = vld [vmem:[%s1899_s11 + $0x70] sm:$0xff]   ;;  %v1718_v17 = vld [vmem:[%s1899_s11 + $0x78] sm:$0xff]  }
  0x20   : > { %v1725_v13 = vld [vmem:[%s1909_s20 + $0x44] ss:$8 sps:$4 sm:$0xff]   ;;  %682 = vmatprep.mubr.bf16.mxu0 %v1722_v12  ;;  %v1717_v16 = vld [vmem:[%s1899_s11 + $0x30] sm:$0xff]   ;;  %v1719_v18 = vld [vmem:[%s1899_s11 + $0x38] sm:$0xff]  }
  0x21   : > { %1521 = vmatpush3.bf16.msra.mxu0 %v1707_v4  ;;  %1639 = vmatpush3.bf16.msra.mxu1 %v1707_v4  ;;  %v1720_v19 = vld [vmem:[%s1909_s20] ss:$8 sps:$4 sm:$0xff]   ;;  %v1726_v21 = vld [vmem:[%s1909_s20 + $0x14] ss:$8 sps:$4 sm:$0xff]   ;;  %v1730_v23 = vld [vmem:[%s1909_s20 + $0x10] ss:$8 sps:$4 sm:$0xff]  }
  0x22   : > { %1522 = vmatprep.subr.bf16.mxu0 %v1708_v5  ;;  %1632 = vmatprep.subr.bf16.mxu1 %v1708_v5  ;;  %v1723_v20 = vld [vmem:[%s1909_s20 + $0x40] ss:$8 sps:$4 sm:$0xff]   ;;  %v1728_v22 = vld [vmem:[%s1909_s20 + $0x54] ss:$8 sps:$4 sm:$0xff]   ;;  %v1731_v24 = vld [vmem:[%s1909_s20 + $0x50] ss:$8 sps:$4 sm:$0xff]  }
  0x23   : > { %714 = vmatprep.mubr.bf16.mxu1 %v1725_v13  ;;  %v1732_v25 = vld [vmem:[%s1909_s20 + $0x24] ss:$8 sps:$4 sm:$0xff]   ;;  %v1736_v27 = vld [vmem:[%s1909_s20 + $0x20] ss:$8 sps:$4 sm:$0xff]   ;;  %v1738_v29 = vld [vmem:[%s1909_s20 + $0x34] ss:$8 sps:$4 sm:$0xff]  }
  0x24   : > { %v1734_v26 = vld [vmem:[%s1909_s20 + $0x64] ss:$8 sps:$4 sm:$0xff]   ;;  %v1737_v28 = vld [vmem:[%s1909_s20 + $0x60] ss:$8 sps:$4 sm:$0xff]   ;;  %v1740_v30 = vld [vmem:[%s1909_s20 + $0x74] ss:$8 sps:$4 sm:$0xff]  }
  0x25   : > { %1523 = vmatpush3.bf16.msra.mxu0 %v1709_v6  ;;  %1640 = vmatpush3.bf16.msra.mxu1 %v1709_v6  ;;  %v1742_v31 = vld [vmem:[%s1909_s20 + $0x30] ss:$8 sps:$4 sm:$0xff]   ;;  %v410_v35 = vld [vmem:[#allocation2] sm:$0xff]  ;;  %v411_v43 = vld [vmem:[#allocation2 + $0x8] sm:$0xff] }
  0x26   : > { %1524 = vmatprep.subr.bf16.mxu0 %v1710_v7  ;;  %1633 = vmatprep.subr.bf16.mxu1 %v1710_v7  ;;  %v1743_v32 = vld [vmem:[%s1909_s20 + $0x70] ss:$8 sps:$4 sm:$0xff]   ;;  %v418_v37 = vld [vmem:[#allocation2 + $0x40] sm:$0xff]  ;;  %v419_v45 = vld [vmem:[#allocation2 + $0x48] sm:$0xff] }
  0x27   : > { %v412_v55 = vld [vmem:[#allocation2 + $0x10] sm:$0xff]  ;;  %v413_v63 = vld [vmem:[#allocation2 + $0x18] sm:$0xff]  ;;  %v422_v13 = vld [vmem:[#allocation2 + $0x60] sm:$0xff] }
  0x28   : > { %v420_v57 = vld [vmem:[#allocation2 + $0x50] sm:$0xff]  ;;  %v421_v1 = vld [vmem:[#allocation2 + $0x58] sm:$0xff] }
  0x29   : > { %1525 = vmatpush3.bf16.msra.mxu0 %v1711_v8  ;;  %1641 = vmatpush3.bf16.msra.mxu1 %v1711_v8 }
  0x2a   : > { %1526 = vmatprep.subr.bf16.mxu0 %v1712_v9  ;;  %1634 = vmatprep.subr.bf16.mxu1 %v1712_v9 }
  0x2d   : > { %1527 = vmatpush3.bf16.msra.mxu0 %v1713_v10  ;;  %1642 = vmatpush3.bf16.msra.mxu1 %v1713_v10 }
  0x2e   : > { %1528 = vmatprep.subr.bf16.mxu0 %v1714_v11  ;;  %1635 = vmatprep.subr.bf16.mxu1 %v1714_v11  ;;  %v414_v11 = vld [vmem:[#allocation2 + $0x20] sm:$0xff] }
  0x31   : > { %1529 = vmatpush3.bf16.msra.mxu0 %v1715_v14  ;;  %1643 = vmatpush3.bf16.msra.mxu1 %v1715_v14 }
  0x32   : > { %1530 = vmatprep.subr.bf16.mxu0 %v1716_v15  ;;  %1636 = vmatprep.subr.bf16.mxu1 %v1716_v15 }
  0x35   : > { %1531 = vmatpush3.bf16.msra.mxu0 %v1717_v16  ;;  %1644 = vmatpush3.bf16.msra.mxu1 %v1717_v16 }
  0x36   : > { %1532 = vmatprep.subr.bf16.mxu0 %v1718_v17  ;;  %1637 = vmatprep.subr.bf16.mxu1 %v1718_v17 }
  0x39   : > { %1533 = vmatpush3.bf16.msra.mxu0 %v1719_v18  ;;  %1645 = vmatpush3.bf16.msra.mxu1 %v1719_v18 }
  0x3c   : > { %683 = vmatmul.mubr.bf16.vlgmr.msra.gmra.mrb[0].mxu0 %v1720_v19  ;;  %715 = vmatmul.mubr.bf16.vlgmr.msra.gmra.mrb[0].mxu1 %v1723_v20  ;;  %v415_v19 = vld [vmem:[#allocation2 + $0x28] sm:$0xff] }
  0x3d   : > { %690 = vmatprep.mubr.bf16.mxu0 %v1726_v21  ;;  %722 = vmatprep.mubr.bf16.mxu1 %v1728_v22  ;;  %v423_v21 = vld [vmem:[#allocation2 + $0x68] sm:$0xff] }
  0x44   : > { %691 = vmatmul.mubr.bf16.gmra.mrb[4].mxu0 %v1730_v23  ;;  %723 = vmatmul.mubr.bf16.gmra.mrb[4].mxu1 %v1731_v24 }
  0x45   : > { %698 = vmatprep.mubr.bf16.mxu0 %v1732_v25  ;;  %730 = vmatprep.mubr.bf16.mxu1 %v1734_v26 }
  0x4c   : > { %699 = vmatmul.mubr.bf16.gmra.mrb[8].mxu0 %v1736_v27  ;;  %731 = vmatmul.mubr.bf16.gmra.mrb[8].mxu1 %v1737_v28 }
  0x4d   : > { %706 = vmatprep.mubr.bf16.mxu0 %v1738_v29  ;;  %738 = vmatprep.mubr.bf16.mxu1 %v1740_v30 }
  0x54   : > { %707 = vmatmul.mubr.bf16.gmra.mrb[12].mxu0 %v1742_v31  ;;  %739 = vmatmul.mubr.bf16.gmra.mrb[12].mxu1 %v1743_v32  ;;  %v416_v31 = vld [vmem:[#allocation2 + $0x30] sm:$0xff] }
 0x10f   : > { %v1534_v33 = vpop.f32.mrb[0].mxu0  ;;  %v1558_v34 = vpop.f32.mrb[0].mxu1 }
 0x110   : > { %v1535_v36 = vpop.f32.mrb[1].mxu0  ;;  %v1559_v38 = vpop.f32.mrb[1].mxu1 }
 0x111   : > { %v1536_v39 = vadd.f32 %v1535_v36, %v1534_v33  ;;  %v1560_v40 = vadd.f32 %v1559_v38, %v1558_v34  ;;  %v1537_v41 = vpop.f32.mrb[2].mxu0  ;;  %v1561_v42 = vpop.f32.mrb[2].mxu1  ;;  %v424_v33 = vld [vmem:[#allocation2 + $0x70] sm:$0xff] }
 0x112   : > { %v1538_v44 = vpop.f32.mrb[3].mxu0  ;;  %v1562_v46 = vpop.f32.mrb[3].mxu1 }
 0x113   : > { %v747_v47 = vadd.f32 %v1536_v39, %v410_v35  ;;  %v755_v48 = vadd.f32 %v1560_v40, %v418_v37  ;;  %v1539_v49 = vadd.f32 %v1538_v44, %v1537_v41  ;;  %v1563_v50 = vadd.f32 %v1562_v46, %v1561_v42  ;;  %v417_v39 = vld [vmem:[#allocation2 + $0x38] sm:$0xff] }
 0x114   : > { %v425_v41 = vld [vmem:[#allocation2 + $0x78] sm:$0xff] }
 0x115   : > { %763 = vst [vmem:[#allocation2] sm:$0xff] %v747_v47  ;;  %771 = vst [vmem:[#allocation2 + $0x40] sm:$0xff] %v755_v48  ;;  %v748_v51 = vadd.f32 %v1539_v49, %v411_v43  ;;  %v756_v52 = vadd.f32 %v1563_v50, %v419_v45  ;;  %v1744_v49 = vld [vmem:[%s2289_s3] sm:$0xff] (%p779_p8)   ;;  %v1745_v50 = vld [vmem:[%s2289_s3 + $0x8] sm:$0xff] (%p779_p8)  }
 0x116   : > { %1598 = vmatprep.subr.bf16.mxu0 (%p779_p8), %v1744_v49  ;;  %1646 = vmatprep.subr.bf16.mxu1 (%p779_p8), %v1744_v49 }
 0x117   : > { %764 = vst [vmem:[#allocation2 + $0x8] sm:$0xff] %v748_v51  ;;  %772 = vst [vmem:[#allocation2 + $0x48] sm:$0xff] %v756_v52  ;;  %v1540_v53 = vpop.f32.mrb[4].mxu0  ;;  %v1564_v54 = vpop.f32.mrb[4].mxu1  ;;  %1599 = vmatpush3.bf16.msra.mxu0 (%p779_p8), %v1744_v49  ;;  %1654 = vmatpush3.bf16.msra.mxu1 (%p779_p8), %v1744_v49  ;;  %v1746_v51 = vld [vmem:[%s2289_s3 + $0x10] sm:$0xff] (%p779_p8)   ;;  %v1747_v52 = vld [vmem:[%s2289_s3 + $0x18] sm:$0xff] (%p779_p8)  }
 0x118   : > { %v1541_v56 = vpop.f32.mrb[5].mxu0  ;;  %v1565_v58 = vpop.f32.mrb[5].mxu1  ;;  %1600 = vmatprep.subr.bf16.mxu0 (%p779_p8), %v1745_v50  ;;  %1647 = vmatprep.subr.bf16.mxu1 (%p779_p8), %v1745_v50  ;;  %v814_v49 = vld [vmem:[%s1904_s17 + $0x70] sm:$0xff] (%p779_p8) }
 0x119   : > { %v1542_v59 = vadd.f32 %v1541_v56, %v1540_v53  ;;  %v1566_v60 = vadd.f32 %v1565_v58, %v1564_v54  ;;  %v1543_v61 = vpop.f32.mrb[6].mxu0  ;;  %v1567_v62 = vpop.f32.mrb[6].mxu1  ;;  %v801_v56 = vld [vmem:[%s1904_s17 + $0x8] sm:$0xff] (%p779_p8) }
 0x11a   : > { %v1544_v0 = vpop.f32.mrb[7].mxu0  ;;  %v1568_v2 = vpop.f32.mrb[7].mxu1 }
 0x11b   : > { %v749_v3 = vadd.f32 %v1542_v59, %v412_v55  ;;  %v757_v4 = vadd.f32 %v1566_v60, %v420_v57  ;;  %v1545_v5 = vadd.f32 %v1544_v0, %v1543_v61  ;;  %v1569_v6 = vadd.f32 %v1568_v2, %v1567_v62  ;;  %1601 = vmatpush3.bf16.msra.mxu0 (%p779_p8), %v1745_v50  ;;  %v800_v55 = vld [vmem:[%s1904_s17] sm:$0xff] (%p779_p8)  ;;  %v809_v62 = vld [vmem:[%s1904_s17 + $0x48] sm:$0xff] (%p779_p8) }
 0x11c   : > { %1655 = vmatpush3.bf16.msra.mxu1 (%p779_p8), %v1745_v50  ;;  %1602 = vmatprep.subr.bf16.mxu0 (%p779_p8), %v1746_v51  ;;  %v784_v53 = vld [vmem:[#allocation2] sm:$0xff] (%p779_p8)  ;;  %v815_v50 = vld [vmem:[%s1904_s17 + $0x78] sm:$0xff] (%p779_p8) }
 0x11d   : > { %765 = vst [vmem:[#allocation2 + $0x10] sm:$0xff] %v749_v3  ;;  %773 = vst [vmem:[#allocation2 + $0x50] sm:$0xff] %v757_v4  ;;  %v750_v7 = vadd.f32 %v1545_v5, %v413_v63  ;;  %v758_v8 = vadd.f32 %v1569_v6, %v421_v1  ;;  %1648 = vmatprep.subr.bf16.mxu1 (%p779_p8), %v1746_v51  ;;  %v816_v57 = vadd.f32 (%p779_p8), %v800_v55, %v784_v53  ;;  %v792_v58 = vld [vmem:[#allocation2 + $0x40] sm:$0xff] (%p779_p8) }
 0x11e   : > { %v785_v54 = vld [vmem:[#allocation2 + $0x8] sm:$0xff] (%p779_p8)  ;;  %v808_v61 = vld [vmem:[%s1904_s17 + $0x40] sm:$0xff] (%p779_p8) }
 0x11f   : > { %766 = vst [vmem:[#allocation2 + $0x18] sm:$0xff] %v750_v7  ;;  %774 = vst [vmem:[#allocation2 + $0x58] sm:$0xff] %v758_v8  ;;  %v1546_v9 = vpop.f32.mrb[8].mxu0  ;;  %v1570_v10 = vpop.f32.mrb[8].mxu1  ;;  %v793_v59 = vld [vmem:[#allocation2 + $0x48] sm:$0xff] (%p779_p8)  ;;  %v817_v60 = vadd.f32 (%p779_p8), %v801_v56, %v785_v54  ;;  %1603 = vmatpush3.bf16.msra.mxu0 (%p779_p8), %v1746_v51  ;;  %v832_v63 = vmax.f32 (%p779_p8), %v816_v57, 0.0  ;;  %v824_v0 = vadd.f32 (%p779_p8), %v808_v61, %v792_v58 }
 0x120   : > { %v1547_v12 = vpop.f32.mrb[9].mxu0  ;;  %v1571_v14 = vpop.f32.mrb[9].mxu1  ;;  %1656 = vmatpush3.bf16.msra.mxu1 (%p779_p8), %v1746_v51  ;;  %v825_v1 = vadd.f32 (%p779_p8), %v809_v62, %v793_v59  ;;  %1604 = vmatprep.subr.bf16.mxu0 (%p779_p8), %v1747_v52  ;;  %v1748_v2 = vld [vmem:[%s2289_s3 + $0x20] sm:$0xff] (%p779_p8)   ;;  %v1749_v7 = vld [vmem:[%s2289_s3 + $0x28] sm:$0xff] (%p779_p8)  }
 0x121   : > { %v1548_v15 = vadd.f32 %v1547_v12, %v1546_v9  ;;  %v1572_v16 = vadd.f32 %v1571_v14, %v1570_v10  ;;  %v1549_v17 = vpop.f32.mrb[10].mxu0  ;;  %v1573_v18 = vpop.f32.mrb[10].mxu1  ;;  %1649 = vmatprep.subr.bf16.mxu1 (%p779_p8), %v1747_v52  ;;  %v833_v3 = vmax.f32 (%p779_p8), %v817_v60, 0.0  ;;  %v840_v4 = vmax.f32 (%p779_p8), %v824_v0, 0.0  ;;  %v803_v12 = vld [vmem:[%s1904_s17 + $0x18] sm:$0xff] (%p779_p8) }
 0x122   : > { %v1550_v20 = vpop.f32.mrb[11].mxu0  ;;  %v1574_v22 = vpop.f32.mrb[11].mxu1  ;;  %v841_v5 = vmax.f32 (%p779_p8), %v825_v1, 0.0  ;;  %v1054_v1 = vlaneseq (%p779_p8) }
 0x123   : > { %v751_v23 = vadd.f32 %v1548_v15, %v414_v11  ;;  %v759_v24 = vadd.f32 %v1572_v16, %v422_v13  ;;  %v1551_v25 = vadd.f32 %v1550_v20, %v1549_v17  ;;  %v1575_v26 = vadd.f32 %v1574_v22, %v1573_v18  ;;  %1605 = vmatpush3.bf16.msra.mxu0 (%p779_p8), %v1747_v52  ;;  %v802_v11 = vld [vmem:[%s1904_s17 + $0x10] sm:$0xff] (%p779_p8)  ;;  %v811_v17 = vld [vmem:[%s1904_s17 + $0x58] sm:$0xff] (%p779_p8)  ;;  %v804_v20 = vld [vmem:[%s1904_s17 + $0x20] sm:$0xff] (%p779_p8) }
 0x124   : > { %v848_v6 = vpack.c.bf16 (%p779_p8), %v833_v3, %v832_v63  ;;  %1657 = vmatpush3.bf16.msra.mxu1 (%p779_p8), %v1747_v52  ;;  %v852_v8 = vpack.c.bf16 (%p779_p8), %v841_v5, %v840_v4  ;;  %1606 = vmatprep.subr.bf16.mxu0 (%p779_p8), %v1748_v2  ;;  %v786_v9 = vld [vmem:[#allocation2 + $0x10] sm:$0xff] (%p779_p8)  ;;  %v2001_v3 = vld [vmem:[%s2290_s4] ss:$0 sm:$0xff] (%p779_p8) }
 0x125   : > { %767 = vst [vmem:[#allocation2 + $0x20] sm:$0xff] %v751_v23  ;;  %775 = vst [vmem:[#allocation2 + $0x60] sm:$0xff] %v759_v24  ;;  %v752_v27 = vadd.f32 %v1551_v25, %v415_v19  ;;  %v760_v28 = vadd.f32 %v1575_v26, %v423_v21  ;;  %1650 = vmatprep.subr.bf16.mxu1 (%p779_p8), %v1748_v2  ;;  %v794_v13 = vld [vmem:[#allocation2 + $0x50] sm:$0xff] (%p779_p8)  ;;  %v805_v21 = vld [vmem:[%s1904_s17 + $0x28] sm:$0xff] (%p779_p8)  ;;  %v818_v26 = vadd.f32 (%p779_p8), %v802_v11, %v786_v9 }
 0x126   : > { %v787_v10 = vld [vmem:[#allocation2 + $0x18] sm:$0xff] (%p779_p8)  ;;  %1614 = vmatprep.mubr.bf16.mxu0 (%p779_p8), %v848_v6  ;;  %1622 = vmatprep.mubr.bf16.mxu1 (%p779_p8), %v852_v8  ;;  %v810_v15 = vld [vmem:[%s1904_s17 + $0x50] sm:$0xff] (%p779_p8)  ;;  %v812_v24 = vld [vmem:[%s1904_s17 + $0x60] sm:$0xff] (%p779_p8) }
 0x127   : > { %768 = vst [vmem:[#allocation2 + $0x28] sm:$0xff] %v752_v27  ;;  %776 = vst [vmem:[#allocation2 + $0x68] sm:$0xff] %v760_v28  ;;  %v1552_v29 = vpop.f32.mrb[12].mxu0  ;;  %v1576_v30 = vpop.f32.mrb[12].mxu1  ;;  %v795_v14 = vld [vmem:[#allocation2 + $0x58] sm:$0xff] (%p779_p8)  ;;  %v1750_v16 = vld [vmem:[%s2289_s3 + $0x30] sm:$0xff] (%p779_p8)   ;;  %1607 = vmatpush3.bf16.msra.mxu0 (%p779_p8), %v1748_v2  ;;  %v819_v27 = vadd.f32 (%p779_p8), %v803_v12, %v787_v10  ;;  %v826_v28 = vadd.f32 (%p779_p8), %v810_v15, %v794_v13 }
 0x128   : > { %v1553_v32 = vpop.f32.mrb[13].mxu0  ;;  %v1577_v34 = vpop.f32.mrb[13].mxu1  ;;  %1658 = vmatpush3.bf16.msra.mxu1 (%p779_p8), %v1748_v2  ;;  %1608 = vmatprep.subr.bf16.mxu0 (%p779_p8), %v1749_v7  ;;  %v813_v25 = vld [vmem:[%s1904_s17 + $0x68] sm:$0xff] (%p779_p8)  ;;  %v1055_v2 = vand.u32 (%p779_p8), 127, %v1054_v1  ;;  %v1032_v6 = vld [vmem:[%s1914_s27 + $0x50] sm:$0xff] (%p779_p8)  ;;  %v1022_v13 = vld [vmem:[%s1914_s27] sm:$0xff] (%p779_p8) }
 0x129   : > { %v1554_v35 = vadd.f32 %v1553_v32, %v1552_v29  ;;  %v1578_v36 = vadd.f32 %v1577_v34, %v1576_v30  ;;  %v1555_v37 = vpop.f32.mrb[14].mxu0  ;;  %v1579_v38 = vpop.f32.mrb[14].mxu1  ;;  %783 = sbr.rel (!%p779_p8) target bundleno = 875 (0x36b), region = 52  ;;  %1651 = vmatprep.subr.bf16.mxu1 (%p779_p8), %v1749_v7  ;;  %v827_v29 = vadd.f32 (%p779_p8), %v811_v17, %v795_v14  ;;  %v1751_v34 = vld [vmem:[%s2289_s3 + $0x38] sm:$0xff] (%p779_p8)   ;;  %v1825_v17 = vmov (%p779_p8), 0.0  }
 0x12a   : > { %v1556_v40 = vpop.f32.mrb[15].mxu0  ;;  %v1580_v42 = vpop.f32.mrb[15].mxu1  ;;  %vm1056_vm0 = vcmp.lt.s32.totalorder (%p779_p8), %v1055_v2, 32  ;;  %v1025_v15 = vld [vmem:[%s1914_s27 + $0x18] sm:$0xff] (%p779_p8) }
 0x12b   : > { %v753_v43 = vadd.f32 %v1554_v35, %v416_v31  ;;  %v761_v44 = vadd.f32 %v1578_v36, %v424_v33  ;;  %v1557_v45 = vadd.f32 %v1556_v40, %v1555_v37  ;;  %v1581_v46 = vadd.f32 %v1580_v42, %v1579_v38  ;;  %1609 = vmatpush3.bf16.msra.mxu0 (%p779_p8), %v1749_v7  ;;  %v806_v42 = vld [vmem:[%s1904_s17 + $0x30] sm:$0xff] (%p779_p8) }
 0x12c   : > { %v788_v18 = vld [vmem:[#allocation2 + $0x20] sm:$0xff] (%p779_p8)  ;;  %1659 = vmatpush3.bf16.msra.mxu1 (%p779_p8), %v1749_v7  ;;  %1610 = vmatprep.subr.bf16.mxu0 (%p779_p8), %v1750_v16  ;;  %v834_v35 = vmax.f32 (%p779_p8), %v818_v26, 0.0  ;;  %v835_v36 = vmax.f32 (%p779_p8), %v819_v27, 0.0  ;;  %v843_v40 = vmax.f32 (%p779_p8), %v827_v29, 0.0  ;;  %v1024_v7 = vld [vmem:[%s1914_s27 + $0x10] sm:$0xff] (%p779_p8) }
 0x12d   : > { %769 = vst [vmem:[#allocation2 + $0x30] sm:$0xff] %v753_v43  ;;  %777 = vst [vmem:[#allocation2 + $0x70] sm:$0xff] %v761_v44  ;;  %v754_v47 = vadd.f32 %v1557_v45, %v417_v39  ;;  %v762_v48 = vadd.f32 %v1581_v46, %v425_v41  ;;  %v796_v22 = vld [vmem:[#allocation2 + $0x60] sm:$0xff] (%p779_p8)  ;;  %v820_v30 = vadd.f32 (%p779_p8), %v804_v20, %v788_v18  ;;  %1652 = vmatprep.subr.bf16.mxu1 (%p779_p8), %v1750_v16  ;;  %v807_v43 = vld [vmem:[%s1904_s17 + $0x38] sm:$0xff] (%p779_p8) }
 0x12e   : > { %v789_v19 = vld [vmem:[#allocation2 + $0x28] sm:$0xff] (%p779_p8)  ;;  %v828_v32 = vadd.f32 (%p779_p8), %v812_v24, %v796_v22  ;;  %v842_v39 = vmax.f32 (%p779_p8), %v826_v28, 0.0  ;;  %v849_v51 = vpack.c.bf16 (%p779_p8), %v835_v36, %v834_v35  ;;  %v2010_v18 = vsel (%p779_p8), %vm1056_vm0, 1.0, %v1825_v17  ;;  %v1030_v27 = vld [vmem:[%s1914_s27 + $0x40] sm:$0xff] (%p779_p8) }
 0x12f   : > { %770 = vst [vmem:[#allocation2 + $0x38] sm:$0xff] %v754_v47  ;;  %778 = vst [vmem:[#allocation2 + $0x78] sm:$0xff] %v762_v48  ;;  %v797_v23 = vld [vmem:[#allocation2 + $0x68] sm:$0xff] (%p779_p8)  ;;  %v821_v31 = vadd.f32 (%p779_p8), %v805_v21, %v789_v19  ;;  %v836_v41 = vmax.f32 (%p779_p8), %v820_v30, 0.0  ;;  %1611 = vmatpush3.bf16.msra.mxu0 (%p779_p8), %v1750_v16 }
 0x130   : > { %v829_v33 = vadd.f32 %v813_v25, %v797_v23  ;;  %1660 = vmatpush3.bf16.msra.mxu1 %v1750_v16  ;;  %v844_v46 = vmax.f32 %v828_v32, 0.0  ;;  %1612 = vmatprep.subr.bf16.mxu0 %v1751_v34  ;;  %v853_v53 = vpack.c.bf16 %v843_v40, %v842_v39 }
 0x131   : > { %v837_v45 = vmax.f32 %v821_v31, 0.0  ;;  %1653 = vmatprep.subr.bf16.mxu1 %v1751_v34  ;;  %v1033_v31 = vld [vmem:[%s1914_s27 + $0x58] sm:$0xff] }
 0x132   : > { %v845_v47 = vmax.f32 %v829_v33, 0.0 }
 0x133   : > { %1613 = vmatpush3.bf16.msra.mxu0 %v1751_v34  ;;  %v850_v57 = vpack.c.bf16 %v837_v45, %v836_v41 }
 0x134   : > { %v790_v37 = vld [vmem:[#allocation2 + $0x30] sm:$0xff]  ;;  %1661 = vmatpush3.bf16.msra.mxu1 %v1751_v34  ;;  %v854_v58 = vpack.c.bf16 %v845_v47, %v844_v46 }
 0x135   : > { %v798_v44 = vld [vmem:[#allocation2 + $0x70] sm:$0xff]  ;;  %v822_v52 = vadd.f32 %v806_v42, %v790_v37  ;;  %v1023_v42 = vld [vmem:[%s1914_s27 + $0x8] sm:$0xff] }
 0x136   : > { %v791_v38 = vld [vmem:[#allocation2 + $0x38] sm:$0xff]  ;;  %v830_v55 = vadd.f32 %v814_v49, %v798_v44  ;;  %1615 = vmatmul.mubr.bf16.vlgmr.msra.gmra.mrb[0].mxu0 %v849_v51 }
 0x137   : > { %v799_v48 = vld [vmem:[#allocation2 + $0x78] sm:$0xff]  ;;  %v823_v54 = vadd.f32 %v807_v43, %v791_v38  ;;  %1623 = vmatmul.mubr.bf16.vlgmr.msra.gmra.mrb[0].mxu1 %v853_v53  ;;  %v838_v59 = vmax.f32 %v822_v52, 0.0  ;;  %1618 = vmatprep.mubr.bf16.mxu0 %v850_v57  ;;  %v1031_v43 = vld [vmem:[%s1914_s27 + $0x48] sm:$0xff] }
 0x138   : > { %v831_v56 = vadd.f32 %v815_v50, %v799_v48  ;;  %v846_v61 = vmax.f32 %v830_v55, 0.0  ;;  %1626 = vmatprep.mubr.bf16.mxu1 %v854_v58  ;;  %v1028_v50 = vld [vmem:[%s1914_s27 + $0x30] sm:$0xff]  ;;  %v1029_v51 = vld [vmem:[%s1914_s27 + $0x38] sm:$0xff] }
 0x139   : > { %v839_v60 = vmax.f32 %v823_v54, 0.0 }
 0x13a   : > { %v847_v62 = vmax.f32 %v831_v56, 0.0 }
 0x13b   : > { %v851_v63 = vpack.c.bf16 %v839_v60, %v838_v59 }
 0x13c   : > { %v855_v0 = vpack.c.bf16 %v847_v62, %v846_v61  ;;  %v1026_v62 = vld [vmem:[%s1914_s27 + $0x20] sm:$0xff] }
 0x13e   : > { %1619 = vmatmul.mubr.bf16.gmra.mrb[4].mxu0 %v851_v63  ;;  %v1027_v63 = vld [vmem:[%s1914_s27 + $0x28] sm:$0xff] }
 0x13f   : > { %1627 = vmatmul.mubr.bf16.gmra.mrb[4].mxu1 %v855_v0 }
 0x209   : > { %v1616_v4 = vpop.f32.mrb[0].mxu0 }
 0x20a   : > { %v1624_v5 = vpop.f32.mrb[0].mxu1  ;;  %v968_v8 = vadd.f32 %v1616_v4, %v2001_v3  ;;  %v959_v10 = vpop.f32.mrb[1].mxu0 }
 0x20b   : > { %v1000_v9 = vadd.f32 %v1624_v5, %v2001_v3  ;;  %v991_v11 = vpop.f32.mrb[1].mxu1  ;;  %v960_v12 = vadd.f32 %v2001_v3, %v959_v10  ;;  %v1617_v14 = vpop.f32.mrb[2].mxu0  ;;  %v1034_v5 = vld [vmem:[%s1914_s27 + $0x60] sm:$0xff] }
 0x20c   : > { %v1625_v16 = vpop.f32.mrb[2].mxu1  ;;  %v971_v19 = vadd.f32 %v1617_v14, %v2001_v3  ;;  %v962_v20 = vpop.f32.mrb[3].mxu0  ;;  %v2015_v23 = vadd.f32 %v1024_v7, %v968_v8  ;;  %v992_v24 = vadd.f32 %v2001_v3, %v991_v11 }
 0x20d   : > { %v994_v21 = vpop.f32.mrb[3].mxu1  ;;  %v2013_v22 = vadd.f32 %v1032_v6, %v1000_v9  ;;  %v1003_v25 = vadd.f32 %v1625_v16, %v2001_v3  ;;  %v2019_v26 = vadd.f32 %v1022_v13, %v960_v12  ;;  %v963_v33 = vadd.f32 %v2001_v3, %v962_v20  ;;  %v1035_v6 = vld [vmem:[%s1914_s27 + $0x68] sm:$0xff]  ;;  %v1037_v16 = vld [vmem:[%s1914_s27 + $0x78] sm:$0xff] }
 0x20e   : > { %v2022_v28 = vadd.f32 %v1025_v15, %v971_v19  ;;  %v1061_v30 = vmul.f32 %v2010_v18, %v2015_v23  ;;  %v2029_v32 = vadd.f32 %v1030_v27, %v992_v24  ;;  %v995_v37 = vadd.f32 %v2001_v3, %v994_v21  ;;  %v1036_v15 = vld [vmem:[%s1914_s27 + $0x70] sm:$0xff] }
 0x20f   : > { %v1069_v29 = vmul.f32 %v2010_v18, %v2013_v22  ;;  %v2032_v36 = vadd.f32 %v1033_v31, %v1003_v25  ;;  %v1059_v39 = vmul.f32 %v2010_v18, %v2019_v26  ;;  %v2045_v52 = vadd.f32 %v1023_v42, %v963_v33 }
 0x210   : > { %1079 = vadd.xlane.f32.xlu1 %v1061_v30  ;;  %v1062_v38 = vmul.f32 %v2010_v18, %v2022_v28  ;;  %v2047_v53 = vadd.f32 %v1031_v43, %v995_v37  ;;  %v1067_v55 = vmul.f32 %v2010_v18, %v2029_v32 }
 0x211   : > { %1095 = vadd.xlane.f32.xlu0 %v1069_v29  ;;  %v1620_v34 = vpop.f32.mrb[4].mxu0  ;;  %v1070_v54 = vmul.f32 %v2010_v18, %v2032_v36  ;;  %v1060_v61 = vmul.f32 %v2010_v18, %v2045_v52 }
 0x212   : > { %v1628_v35 = vpop.f32.mrb[4].mxu1  ;;  %v975_v40 = vpop.f32.mrb[5].mxu0  ;;  %v984_v46 = vadd.f32 %v1620_v34, %v2001_v3  ;;  %v1068_v60 = vmul.f32 %v2010_v18, %v2047_v53 }
 0x213   : > { %v1007_v41 = vpop.f32.mrb[5].mxu1  ;;  %v1621_v44 = vpop.f32.mrb[6].mxu0  ;;  %v976_v58 = vadd.f32 %v2001_v3, %v975_v40  ;;  %v1016_v11 = vadd.f32 %v1628_v35, %v2001_v3 }
 0x214   : > { %v1629_v45 = vpop.f32.mrb[6].mxu1  ;;  %1081 = vadd.xlane.f32.xlu1 %v1062_v38  ;;  %v987_v47 = vadd.f32 %v1621_v44, %v2001_v3  ;;  %v978_v48 = vpop.f32.mrb[7].mxu0  ;;  %v2053_v56 = vadd.f32 %v1028_v50, %v984_v46  ;;  %v1008_v0 = vadd.f32 %v2001_v3, %v1007_v41 }
 0x215   : > { %1075 = vadd.xlane.f32.xlu0 %v1059_v39  ;;  %v1010_v49 = vpop.f32.mrb[7].mxu1  ;;  %v979_v59 = vadd.f32 %v2001_v3, %v978_v48  ;;  %v2073_v7 = vadd.f32 %v1026_v62, %v976_v58  ;;  %v1019_v12 = vadd.f32 %v1629_v45, %v2001_v3  ;;  %v2093_v20 = vadd.f32 %v1036_v15, %v1016_v11 }
 0x216   : > { %v2055_v57 = vadd.f32 %v1029_v51, %v987_v47  ;;  %v1065_v2 = vmul.f32 %v2010_v18, %v2053_v56  ;;  %v1011_v4 = vadd.f32 %v2001_v3, %v1010_v49  ;;  %v2077_v9 = vadd.f32 %v1034_v5, %v1008_v0 }
 0x217   : > { %v2075_v8 = vadd.f32 %v1027_v63, %v979_v59  ;;  %v1063_v14 = vmul.f32 %v2010_v18, %v2073_v7  ;;  %v2095_v21 = vadd.f32 %v1037_v16, %v1019_v12  ;;  %v1073_v24 = vmul.f32 %v2010_v18, %v2093_v20 }
 0x218   : > { %1097 = vadd.xlane.f32.xlu1 %v1070_v54  ;;  %v1066_v1 = vmul.f32 %v2010_v18, %v2055_v57  ;;  %v2079_v10 = vadd.f32 %v1035_v6, %v1011_v4  ;;  %v1071_v19 = vmul.f32 %v2010_v18, %v2077_v9 }
 0x219   : > { %1091 = vadd.xlane.f32.xlu0 %v1067_v55  ;;  %v1064_v13 = vmul.f32 %v2010_v18, %v2075_v8  ;;  %v1074_v3 = vmul.f32 %v2010_v18, %v2095_v21 }
 0x21a   : > { %v1072_v17 = vmul.f32 %v2010_v18, %v2079_v10 }
 0x21c   : > { %1093 = vadd.xlane.f32.xlu1 %v1068_v60 }
 0x21d   : > { %1077 = vadd.xlane.f32.xlu0 %v1060_v61 }
 0x220   : > { %1089 = vadd.xlane.f32.xlu1 %v1066_v1 }
 0x221   : > { %1087 = vadd.xlane.f32.xlu0 %v1065_v2 }
 0x224   : > { %1085 = vadd.xlane.f32.xlu1 %v1064_v13 }
 0x225   : > { %1083 = vadd.xlane.f32.xlu0 %v1063_v14 }
 0x228   : > { %1101 = vadd.xlane.f32.xlu1 %v1072_v17 }
 0x229   : > { %1099 = vadd.xlane.f32.xlu0 %v1071_v19 }
 0x22c   : > { %1105 = vadd.xlane.f32.xlu1 %v1074_v3 }
 0x22d   : > { %1103 = vadd.xlane.f32.xlu0 %v1073_v24 }
 0x29d   : > { %v1080_v27 = vpop.xlane.xlu1 %1079 }
 0x29e   : > { %v1096_v25 = vpop.xlane.xlu0 %1095  ;;  %v1109_v30 = vmul.f32 0.03125, %v1080_v27 }
 0x29f   : > { %v1117_v29 = vmul.f32 0.03125, %v1096_v25 }
 0x2a0   : > { %v1125_v33 = vsub.f32 %v2015_v23, %v1109_v30 }
 0x2a1   : > { %v1133_v31 = vsub.f32 %v2013_v22, %v1117_v29  ;;  %v1082_v34 = vpop.xlane.xlu1 %1081 }
 0x2a2   : > { %v1076_v35 = vpop.xlane.xlu0 %1075  ;;  %v1110_v37 = vmul.f32 0.03125, %v1082_v34  ;;  %v2104_v39 = vmul.f32 %v2010_v18, %v1125_v33 }
 0x2a3   : > { %v1107_v38 = vmul.f32 0.03125, %v1076_v35  ;;  %v2111_v43 = vmul.f32 %v2010_v18, %v1133_v31 }
 0x2a4   : > { %v1126_v40 = vsub.f32 %v2022_v28, %v1110_v37  ;;  %v1157_v42 = vmul.f32 %v2104_v39, %v2104_v39 }
 0x2a5   : > { %v1123_v41 = vsub.f32 %v2019_v26, %v1107_v38  ;;  %v1098_v22 = vpop.xlane.xlu1 %1097  ;;  %v1165_v49 = vmul.f32 %v2111_v43, %v2111_v43 }
 0x2a6   : > { %v1092_v44 = vpop.xlane.xlu0 %1091  ;;  %v1118_v23 = vmul.f32 0.03125, %v1098_v22  ;;  %1175 = vadd.xlane.f32.xlu0 %v1157_v42  ;;  %v2114_v46 = vmul.f32 %v2010_v18, %v1126_v40 }
 0x2a7   : > { %v1115_v45 = vmul.f32 0.03125, %v1092_v44  ;;  %v2117_v47 = vmul.f32 %v2010_v18, %v1123_v41 }
 0x2a8   : > { %v1134_v28 = vsub.f32 %v2032_v36, %v1118_v23  ;;  %v1158_v48 = vmul.f32 %v2114_v46, %v2114_v46 }
 0x2a9   : > { %v1131_v26 = vsub.f32 %v2029_v32, %v1115_v45  ;;  %v1094_v50 = vpop.xlane.xlu1 %1093  ;;  %v1155_v36 = vmul.f32 %v2117_v47, %v2117_v47 }
 0x2aa   : > { %v1078_v51 = vpop.xlane.xlu0 %1077  ;;  %v1116_v54 = vmul.f32 0.03125, %v1094_v50  ;;  %1177 = vadd.xlane.f32.xlu1 %v1158_v48  ;;  %1191 = vadd.xlane.f32.xlu0 %v1165_v49  ;;  %v2126_v58 = vmul.f32 %v2010_v18, %v1134_v28 }
 0x2ab   : > { %v1108_v55 = vmul.f32 0.03125, %v1078_v51  ;;  %v2135_v61 = vmul.f32 %v2010_v18, %v1131_v26 }
 0x2ac   : > { %v1132_v32 = vsub.f32 %v2047_v53, %v1116_v54  ;;  %v1166_v60 = vmul.f32 %v2126_v58, %v2126_v58 }
 0x2ad   : > { %v1124_v59 = vsub.f32 %v2045_v52, %v1108_v55  ;;  %v1090_v62 = vpop.xlane.xlu1 %1089  ;;  %v1163_v5 = vmul.f32 %v2135_v61, %v2135_v61 }
 0x2ae   : > { %v1088_v63 = vpop.xlane.xlu0 %1087  ;;  %v1114_v0 = vmul.f32 0.03125, %v1090_v62  ;;  %1193 = vadd.xlane.f32.xlu1 %v1166_v60  ;;  %1171 = vadd.xlane.f32.xlu0 %v1155_v36  ;;  %v2141_v4 = vmul.f32 %v2010_v18, %v1132_v32 }
 0x2af   : > { %v1113_v1 = vmul.f32 0.03125, %v1088_v63  ;;  %v2138_v2 = vmul.f32 %v2010_v18, %v1124_v59 }
 0x2b0   : > { %v1130_v52 = vsub.f32 %v2055_v57, %v1114_v0  ;;  %v1164_v57 = vmul.f32 %v2141_v4, %v2141_v4 }
 0x2b1   : > { %v1129_v53 = vsub.f32 %v2053_v56, %v1113_v1  ;;  %v1156_v6 = vmul.f32 %v2138_v2, %v2138_v2  ;;  %v1086_v11 = vpop.xlane.xlu1 %1085 }
 0x2b2   : > { %v1084_v12 = vpop.xlane.xlu0 %1083  ;;  %v1112_v13 = vmul.f32 0.03125, %v1086_v11  ;;  %1187 = vadd.xlane.f32.xlu0 %v1163_v5  ;;  %v2159_v19 = vmul.f32 %v2010_v18, %v1130_v52 }
 0x2b3   : > { %v1111_v14 = vmul.f32 0.03125, %v1084_v12  ;;  %1173 = vadd.xlane.f32.xlu1 %v1156_v6  ;;  %v2150_v15 = vmul.f32 %v2010_v18, %v1129_v53  ;;  %v2200_v6 = vld [vmem:[%s2290_s4 + $0x1] ss:$0 sm:$0xff] }
 0x2b4   : > { %v1128_v56 = vsub.f32 %v2075_v8, %v1112_v13  ;;  %v1162_v31 = vmul.f32 %v2159_v19, %v2159_v19 }
 0x2b5   : > { %v1127_v16 = vsub.f32 %v2073_v7, %v1111_v14  ;;  %v1161_v17 = vmul.f32 %v2150_v15, %v2150_v15  ;;  %v1102_v3 = vpop.xlane.xlu1 %1101 }
 0x2b6   : > { %v1100_v24 = vpop.xlane.xlu0 %1099  ;;  %v1120_v25 = vmul.f32 0.03125, %v1102_v3  ;;  %v2165_v30 = vmul.f32 %v2010_v18, %v1128_v56  ;;  %v2206_v56 = vld [vmem:[%s2290_s4 + $0x2] ss:$0 sm:$0xff] }
 0x2b7   : > { %v1119_v27 = vmul.f32 0.03125, %v1100_v24  ;;  %1189 = vadd.xlane.f32.xlu1 %v1164_v57  ;;  %1183 = vadd.xlane.f32.xlu0 %v1161_v17  ;;  %v2162_v29 = vmul.f32 %v2010_v18, %v1127_v16 }
 0x2b8   : > { %v1136_v7 = vsub.f32 %v2079_v10, %v1120_v25  ;;  %v1160_v10 = vmul.f32 %v2165_v30, %v2165_v30 }
 0x2b9   : > { %v1135_v8 = vsub.f32 %v2077_v9, %v1119_v27  ;;  %v1159_v33 = vmul.f32 %v2162_v29, %v2162_v29  ;;  %v1106_v34 = vpop.xlane.xlu1 %1105 }
 0x2ba   : > { %v1104_v35 = vpop.xlane.xlu0 %1103  ;;  %v1122_v37 = vmul.f32 0.03125, %v1106_v34  ;;  %v2183_v22 = vmul.f32 %v2010_v18, %v1136_v7 }
 0x2bb   : > { %v1121_v38 = vmul.f32 0.03125, %v1104_v35  ;;  %1185 = vadd.xlane.f32.xlu1 %v1162_v31  ;;  %1179 = vadd.xlane.f32.xlu0 %v1159_v33  ;;  %v2174_v40 = vmul.f32 %v2010_v18, %v1135_v8 }
 0x2bc   : > { %v1138_v9 = vsub.f32 %v2095_v21, %v1122_v37  ;;  %v1168_v23 = vmul.f32 %v2183_v22, %v2183_v22 }
 0x2bd   : > { %v1137_v41 = vsub.f32 %v2093_v20, %v1121_v38  ;;  %v1167_v42 = vmul.f32 %v2174_v40, %v2174_v40 }
 0x2be   : > { %v2193_v21 = vmul.f32 %v2010_v18, %v1138_v9 }
 0x2bf   : > { %1181 = vadd.xlane.f32.xlu1 %v1160_v10  ;;  %1195 = vadd.xlane.f32.xlu0 %v1167_v42  ;;  %v2186_v44 = vmul.f32 %v2010_v18, %v1137_v41 }
 0x2c0   : > { %v1170_v20 = vmul.f32 %v2193_v21, %v2193_v21 }
 0x2c1   : > { %v1169_v45 = vmul.f32 %v2186_v44, %v2186_v44 }
 0x2c3   : > { %1197 = vadd.xlane.f32.xlu1 %v1168_v23  ;;  %1199 = vadd.xlane.f32.xlu0 %v1169_v45 }
 0x2c7   : > { %1201 = vadd.xlane.f32.xlu1 %v1170_v20 }
 0x333   : > { %v1176_v28 = vpop.xlane.xlu0 %1175 }
 0x334   : > { %v1205_v26 = vmul.f32 0.03125, %v1176_v28 }
 0x336   : > { %v1221_v48 = vadd.f32 1e-08, %v1205_v26 }
 0x337   : > { %v1178_v49 = vpop.xlane.xlu1 %1177  ;;  %v1192_v50 = vpop.xlane.xlu0 %1191 }
 0x338   : > { %1752 = vrsqrt.f32 %v1221_v48  ;;  %v1206_v51 = vmul.f32 0.03125, %v1178_v49  ;;  %v1213_v54 = vmul.f32 0.03125, %v1192_v50 }
 0x33a   : > { %v1222_v55 = vadd.f32 1e-08, %v1206_v51  ;;  %v1229_v36 = vadd.f32 1e-08, %v1213_v54 }
 0x33b   : > { %v1194_v32 = vpop.xlane.xlu1 %1193  ;;  %v1172_v59 = vpop.xlane.xlu0 %1171 }
 0x33c   : > { %1754 = vrsqrt.f32 %v1222_v55  ;;  %v1214_v18 = vmul.f32 0.03125, %v1194_v32  ;;  %v1203_v60 = vmul.f32 0.03125, %v1172_v59 }
 0x33d   : > { %1756 = vrsqrt.f32 %v1229_v36 }
 0x33e   : > { %v1230_v62 = vadd.f32 1e-08, %v1214_v18  ;;  %v1219_v63 = vadd.f32 1e-08, %v1203_v60 }
 0x33f   : > { %v1188_v1 = vpop.xlane.xlu0 %1187 }
 0x340   : > { %v1174_v0 = vpop.xlane.xlu1 %1173  ;;  %1758 = vrsqrt.f32 %v1230_v62  ;;  %v1211_v53 = vmul.f32 0.03125, %v1188_v1 }
 0x341   : > { %v1204_v52 = vmul.f32 0.03125, %v1174_v0  ;;  %1760 = vrsqrt.f32 %v1219_v63 }
 0x342   : > { %v1753_v5 = vpop.eup %1752  ;;  %v1227_v12 = vadd.f32 1e-08, %v1211_v53 }
 0x343   : > { %v1220_v11 = vadd.f32 1e-08, %v1204_v52  ;;  %v1253_v13 = vmul.f32 %v1753_v5, %v2104_v39 }
 0x344   : > { %v1190_v14 = vpop.xlane.xlu1 %1189  ;;  %v1184_v57 = vpop.xlane.xlu0 %1183 }
 0x345   : > { %1762 = vrsqrt.f32 %v1220_v11  ;;  %v1212_v16 = vmul.f32 0.03125, %v1190_v14  ;;  %v1209_v17 = vmul.f32 0.03125, %v1184_v57  ;;  %v1274_v3 = vmul.f32 %v2200_v6, %v1253_v13 }
 0x346   : > { %1764 = vrsqrt.f32 %v1227_v12  ;;  %v1755_v24 = vpop.eup %1754 }
 0x347   : > { %v1228_v25 = vadd.f32 1e-08, %v1212_v16  ;;  %v1225_v27 = vadd.f32 1e-08, %v1209_v17  ;;  %v1757_v7 = vpop.eup %1756  ;;  %v1295_v39 = vadd.f32 %v2206_v56, %v1274_v3  ;;  %v1254_v8 = vmul.f32 %v1755_v24, %v2114_v46 }
 0x348   : > { %v1186_v31 = vpop.xlane.xlu1 %1185  ;;  %v1180_v33 = vpop.xlane.xlu0 %1179  ;;  %v1261_v34 = vmul.f32 %v1757_v7, %v2111_v43 }
 0x349   : > { %1766 = vrsqrt.f32 %v1228_v25  ;;  %v1210_v35 = vmul.f32 0.03125, %v1186_v31  ;;  %v1207_v37 = vmul.f32 0.03125, %v1180_v33  ;;  %1311 = vst [vmem:[%s1919_s28 + $0x10] sm:$0xff] %v1295_v39  ;;  %v1275_v38 = vmul.f32 %v2200_v6, %v1254_v8 }
 0x34a   : > { %1768 = vrsqrt.f32 %v1225_v27  ;;  %v1759_v10 = vpop.eup %1758  ;;  %v1282_v9 = vmul.f32 %v2200_v6, %v1261_v34 }
 0x34b   : > { %v1226_v41 = vadd.f32 1e-08, %v1210_v35  ;;  %v1223_v42 = vadd.f32 1e-08, %v1207_v37  ;;  %v1761_v23 = vpop.eup %1760  ;;  %v1296_v46 = vadd.f32 %v2206_v56, %v1275_v38  ;;  %v1262_v45 = vmul.f32 %v1759_v10, %v2126_v58 }
 0x34c   : > { %v1182_v43 = vpop.xlane.xlu1 %1181  ;;  %v1196_v20 = vpop.xlane.xlu0 %1195  ;;  %v1303_v28 = vadd.f32 %v2206_v56, %v1282_v9  ;;  %v1251_v26 = vmul.f32 %v1761_v23, %v2117_v47 }
 0x34d   : > { %1770 = vrsqrt.f32 %v1226_v41  ;;  %v1208_v48 = vmul.f32 0.03125, %v1182_v43  ;;  %1312 = vst [vmem:[%s1919_s28 + $0x18] sm:$0xff] %v1296_v46  ;;  %v1283_v49 = vmul.f32 %v2200_v6, %v1262_v45  ;;  %v1215_v50 = vmul.f32 0.03125, %v1196_v20 }
 0x34e   : > { %1772 = vrsqrt.f32 %v1223_v42  ;;  %1319 = vst [vmem:[%s1919_s28 + $0x50] sm:$0xff] %v1303_v28  ;;  %v1272_v54 = vmul.f32 %v2200_v6, %v1251_v26 }
 0x34f   : > { %v1763_v51 = vpop.eup %1762  ;;  %v1224_v55 = vadd.f32 1e-08, %v1208_v48  ;;  %v1304_v36 = vadd.f32 %v2206_v56, %v1283_v49  ;;  %v1231_v47 = vadd.f32 1e-08, %v1215_v50 }
 0x350   : > { %v1765_v58 = vpop.eup %1764  ;;  %v1252_v32 = vmul.f32 %v1763_v51, %v2138_v2  ;;  %v1198_v59 = vpop.xlane.xlu1 %1197  ;;  %v1293_v60 = vadd.f32 %v2206_v56, %v1272_v54 }
 0x351   : > { %v1200_v18 = vpop.xlane.xlu0 %1199  ;;  %v1259_v62 = vmul.f32 %v1765_v58, %v2135_v61  ;;  %1774 = vrsqrt.f32 %v1224_v55  ;;  %v1216_v63 = vmul.f32 0.03125, %v1198_v59  ;;  %1320 = vst [vmem:[%s1919_s28 + $0x58] sm:$0xff] %v1304_v36 }
 0x352   : > { %v1273_v0 = vmul.f32 %v2200_v6, %v1252_v32  ;;  %1776 = vrsqrt.f32 %v1231_v47  ;;  %v1217_v1 = vmul.f32 0.03125, %v1200_v18  ;;  %1309 = vst [vmem:[%s1919_s28] sm:$0xff] %v1293_v60 }
 0x353   : > { %v1767_v52 = vpop.eup %1766  ;;  %v1280_v2 = vmul.f32 %v2200_v6, %v1259_v62  ;;  %v1232_v53 = vadd.f32 1e-08, %v1216_v63 }
 0x354   : > { %v1769_v5 = vpop.eup %1768  ;;  %v1294_v11 = vadd.f32 %v2206_v56, %v1273_v0  ;;  %v1260_v12 = vmul.f32 %v1767_v52, %v2141_v4  ;;  %v1233_v61 = vadd.f32 1e-08, %v1217_v1  ;;  %v1202_v13 = vpop.xlane.xlu1 %1201 }
 0x355   : > { %v1301_v14 = vadd.f32 %v2206_v56, %v1280_v2  ;;  %v1257_v57 = vmul.f32 %v1769_v5, %v2150_v15  ;;  %1778 = vrsqrt.f32 %v1232_v53  ;;  %v1218_v16 = vmul.f32 0.03125, %v1202_v13 }
 0x356   : > { %1310 = vst [vmem:[%s1919_s28 + $0x8] sm:$0xff] %v1294_v11  ;;  %v1281_v17 = vmul.f32 %v2200_v6, %v1260_v12  ;;  %1780 = vrsqrt.f32 %v1233_v61 }
 0x357   : > { %v1771_v3 = vpop.eup %1770  ;;  %1317 = vst [vmem:[%s1919_s28 + $0x40] sm:$0xff] %v1301_v14  ;;  %v1278_v24 = vmul.f32 %v2200_v6, %v1257_v57  ;;  %v1234_v25 = vadd.f32 1e-08, %v1218_v16 }
 0x358   : > { %v1773_v4 = vpop.eup %1772  ;;  %v1302_v27 = vadd.f32 %v2206_v56, %v1281_v17  ;;  %v1258_v7 = vmul.f32 %v1771_v3, %v2159_v19 }
 0x359   : > { %v1299_v15 = vadd.f32 %v2206_v56, %v1278_v24  ;;  %v1255_v39 = vmul.f32 %v1773_v4, %v2162_v29  ;;  %1782 = vrsqrt.f32 %v1234_v25 }
 0x35a   : > { %1318 = vst [vmem:[%s1919_s28 + $0x48] sm:$0xff] %v1302_v27  ;;  %v1279_v8 = vmul.f32 %v2200_v6, %v1258_v7 }
 0x35b   : > { %v1775_v31 = vpop.eup %1774  ;;  %1315 = vst [vmem:[%s1919_s28 + $0x30] sm:$0xff] %v1299_v15  ;;  %v1276_v33 = vmul.f32 %v2200_v6, %v1255_v39 }
 0x35c   : > { %v1777_v34 = vpop.eup %1776  ;;  %v1300_v35 = vadd.f32 %v2206_v56, %v1279_v8  ;;  %v1256_v37 = vmul.f32 %v1775_v31, %v2165_v30 }
 0x35d   : > { %v1297_v19 = vadd.f32 %v2206_v56, %v1276_v33  ;;  %v1263_v38 = vmul.f32 %v1777_v34, %v2174_v40 }
 0x35e   : > { %1316 = vst [vmem:[%s1919_s28 + $0x38] sm:$0xff] %v1300_v35  ;;  %v1277_v29 = vmul.f32 %v2200_v6, %v1256_v37 }
 0x35f   : > { %v1779_v10 = vpop.eup %1778  ;;  %1313 = vst [vmem:[%s1919_s28 + $0x20] sm:$0xff] %v1297_v19  ;;  %v1284_v9 = vmul.f32 %v2200_v6, %v1263_v38 }
 0x360   : > { %v1781_v41 = vpop.eup %1780  ;;  %v1298_v42 = vadd.f32 %v2206_v56, %v1277_v29  ;;  %v1264_v30 = vmul.f32 %v1779_v10, %v2183_v22 }
 0x361   : > { %v1305_v23 = vadd.f32 %v2206_v56, %v1284_v9  ;;  %v1265_v46 = vmul.f32 %v1781_v41, %v2186_v44 }
 0x362   : > { %1314 = vst [vmem:[%s1919_s28 + $0x28] sm:$0xff] %v1298_v42  ;;  %v1285_v40 = vmul.f32 %v2200_v6, %v1264_v30 }
 0x363   : > { %v1783_v45 = vpop.eup %1782  ;;  %1321 = vst [vmem:[%s1919_s28 + $0x60] sm:$0xff] %v1305_v23  ;;  %v1286_v43 = vmul.f32 %v2200_v6, %v1265_v46 }
 0x364   : > { %v1306_v20 = vadd.f32 %v2206_v56, %v1285_v40  ;;  %v1266_v28 = vmul.f32 %v1783_v45, %v2193_v21 }
 0x365   : > { %v1307_v26 = vadd.f32 %v2206_v56, %v1286_v43 }
 0x366   : > { %1322 = vst [vmem:[%s1919_s28 + $0x68] sm:$0xff] %v1306_v20  ;;  %v1287_v22 = vmul.f32 %v2200_v6, %v1266_v28 }
 0x367   : > { %1323 = vst [vmem:[%s1919_s28 + $0x70] sm:$0xff] %v1307_v26 }
 0x368   : > { %v1308_v48 = vadd.f32 %v2206_v56, %v1287_v22 }
 0x36a   : > { %1324 = vst [vmem:[%s1919_s28 + $0x78] sm:$0xff] %v1308_v48 }
 0x36b PF: > { %s16_s25 = sadd.s32 1, %s1822_s25   ;;  %s2294_s11 = sld [smem:[#allocation3_spill]] }
 0x36c   : > { %p13_p9 = scmp.ge.s32.totalorder %s16_s25, 6   ;;  %s2295_s21 = smov %s1814_s23 }
 0x36d   : > { %s2296_s22 = smov %s1818_s24  ;;  %s2297_s23 = smov %s2300_s26 }
 0x36e   :  { %15 = sbr.rel (!%p13_p9) target bundleno = 3 (0x3), region = 91 }
 0x371   : > { %s2298_s24 = smov %s2294_s11 }

</bundles_post_ra>
